<compile_context>
chip_gen: v6e
topology: v6e:2x2x1
jax: 0.10.0
libtpu: 0.0.40
codegen_flags: <defaults>
</compile_context>

<pallas_src>
import functools
import math

import jax
import jax.numpy as jnp
from jax.experimental import pallas as pl
from jax.experimental.pallas import tpu as pltpu

_VMEM_LIMIT = 64 * 1024 * 1024


def _rup(x, m):
    return (x + m - 1) // m * m


def _pick_rb(h, w, cap=512):
    """Largest row block RB dividing h with RB*w <= cap and RB*w % 8 == 0."""
    if h * w <= cap:
        return h
    best = None
    for cand in range(1, h + 1):
        if h % cand:
            continue
        m = cand * w
        if m <= cap and (m % 8 == 0 or m == h * w):
            best = cand
    return best if best is not None else h


def _pick_hw_tile(hw, cap=512):
    if hw <= cap:
        return hw
    best = None
    for cand in range(1, hw + 1):
        if hw % cand == 0 and cand <= cap and cand % 8 == 0:
            best = cand
    return best if best is not None else hw


# ----------------------------------------------------------------------------
# Kernel 1: tiled matmul + bias + activation (1x1 convs / backbone stand-ins)
# ----------------------------------------------------------------------------
def _mm_kernel_nk1(a_ref, b_ref, bias_ref, o_ref, *, act, pre_relu):
    a = a_ref[...]
    if pre_relu:
        a = jnp.maximum(a, 0.0)
    y = jnp.dot(a, b_ref[...], preferred_element_type=jnp.float32) + bias_ref[...]
    if act == "relu":
        y = jnp.maximum(y, 0.0)
    elif act == "sigmoid":
        y = jax.nn.sigmoid(y)
    o_ref[...] = y.astype(o_ref.dtype)


def _mm_kernel(a_ref, b_ref, bias_ref, o_ref, acc_ref, *, act, pre_relu, nk):
    k = pl.program_id(2)

    @pl.when(k == 0)
    def _():
        acc_ref[...] = jnp.zeros_like(acc_ref)

    a = a_ref[...]
    if pre_relu:
        a = jnp.maximum(a, 0.0)
    acc_ref[...] += jnp.dot(a, b_ref[...], preferred_element_type=jnp.float32)

    @pl.when(k == nk - 1)
    def _():
        y = acc_ref[...] + bias_ref[...]
        if act == "relu":
            y = jnp.maximum(y, 0.0)
        elif act == "sigmoid":
            y = jax.nn.sigmoid(y)
        o_ref[...] = y.astype(o_ref.dtype)


def matmul_bias_act(a, b, bias, act=None, pre_relu=False, out_dtype=jnp.bfloat16):
    m, k = a.shape
    n = b.shape[1]
    if m <= 128:
        tm = _rup(m, 8)
    elif m <= 2048:
        tm = 128
    else:
        tm = 256
    tn = min(256, _rup(n, 128))
    tk = k if k <= 2048 else 1024
    mp, kp, np_ = _rup(m, tm), _rup(k, tk), _rup(n, tn)
    a_p = a if a.dtype == jnp.bfloat16 else a.astype(jnp.bfloat16)
    b_p = b if b.dtype == jnp.bfloat16 else b.astype(jnp.bfloat16)
    a_p = jnp.pad(a_p, ((0, mp - m), (0, kp - k)))
    b_p = jnp.pad(b_p, ((0, kp - k), (0, np_ - n)))
    bias_p = jnp.pad(bias.astype(jnp.float32), (0, np_ - n)).reshape(1, np_)
    nk = kp // tk
    if nk == 1:
        out = pl.pallas_call(
            functools.partial(_mm_kernel_nk1, act=act, pre_relu=pre_relu),
            out_shape=jax.ShapeDtypeStruct((mp, np_), out_dtype),
            grid_spec=pltpu.PrefetchScalarGridSpec(
                num_scalar_prefetch=0, grid=(mp // tm, np_ // tn),
                in_specs=[pl.BlockSpec((tm, kp), lambda i, j: (i, 0)),
                          pl.BlockSpec((kp, tn), lambda i, j: (0, j)),
                          pl.BlockSpec((1, tn), lambda i, j: (0, j))],
                out_specs=pl.BlockSpec((tm, tn), lambda i, j: (i, j))),
            compiler_params=pltpu.CompilerParams(
                dimension_semantics=("parallel", "parallel"),
                vmem_limit_bytes=_VMEM_LIMIT),
        )(a_p, b_p, bias_p)
    else:
        grid = (mp // tm, np_ // tn, nk)
        out = pl.pallas_call(
            functools.partial(_mm_kernel, act=act, pre_relu=pre_relu, nk=nk),
            out_shape=jax.ShapeDtypeStruct((mp, np_), out_dtype),
            grid_spec=pltpu.PrefetchScalarGridSpec(
                num_scalar_prefetch=0, grid=grid,
                in_specs=[pl.BlockSpec((tm, tk), lambda i, j, kk: (i, kk)),
                          pl.BlockSpec((tk, tn), lambda i, j, kk: (kk, j)),
                          pl.BlockSpec((1, tn), lambda i, j, kk: (0, j))],
                out_specs=pl.BlockSpec((tm, tn), lambda i, j, kk: (i, j)),
                scratch_shapes=[pltpu.VMEM((tm, tn), jnp.float32)]),
            compiler_params=pltpu.CompilerParams(
                dimension_semantics=("parallel", "parallel", "arbitrary"),
                vmem_limit_bytes=_VMEM_LIMIT),
        )(a_p, b_p, bias_p)
    return out[:m, :n]


def conv1x1(p, x, act=None, pre_relu=False, out_dtype=jnp.bfloat16):
    n, h, w, c = x.shape
    cout = p["w"].shape[-1]
    y = matmul_bias_act(x.reshape(n * h * w, c), p["w"].reshape(c, cout), p["b"],
                        act=act, pre_relu=pre_relu, out_dtype=out_dtype)
    return y.reshape(n, h, w, cout)


# ----------------------------------------------------------------------------
# Kernel 2: im2col-free 3x3 (dilated) "same" conv, row-blocked grid
# ----------------------------------------------------------------------------
def _conv3x3_kernel(*refs, rb, ow, dil, pre_relu, act, has_add, has_scale):
    idx = 0
    x_ref = refs[idx]; idx += 1
    w_ref = refs[idx]; idx += 1
    b_ref = refs[idx]; idx += 1
    scale_ref = None
    if has_scale:
        scale_ref = refs[idx]; idx += 1
    add_ref = None
    if has_add:
        add_ref = refs[idx]; idx += 1
    o_ref = refs[idx]; idx += 1
    acc_ref = refs[idx]

    r0 = pl.program_id(1) * rb
    m = rb * ow
    cin = w_ref.shape[1]
    for t in range(9):                              # static unroll over taps
        dy, dx = (t // 3) * dil, (t % 3) * dil
        tap = x_ref[0, pl.ds(r0 + dy, rb), pl.ds(dx, ow), :].reshape(m, cin)
        if scale_ref is not None:                   # fused per-channel gate
            tap = tap.astype(jnp.float32) * scale_ref[0]
        if pre_relu:                                # folded BN->ReLU on input
            tap = jnp.maximum(tap, 0.0)
        part = jnp.dot(tap.astype(jnp.bfloat16), w_ref[t],
                       preferred_element_type=jnp.float32)
        if t == 0:
            acc_ref[...] = part
        else:
            acc_ref[...] += part
    y = acc_ref[...] + b_ref[...]
    if add_ref is not None:                         # fused residual add
        y = y + add_ref[0].astype(jnp.float32)
    if act == "relu":
        y = jnp.maximum(y, 0.0)
    elif act == "sigmoid":
        y = jax.nn.sigmoid(y)
    o_ref[0] = y.astype(o_ref.dtype)


def conv3x3(p, x, dilation=1, act=None, pre_relu=False, add=None, in_scale=None,
            cout_pad=None, out_dtype=jnp.bfloat16):
    n, h, w, cin = x.shape
    cout = p["w"].shape[-1]
    wk = p["w"].reshape(9, cin, cout)
    bk = p["b"]
    if cout_pad is not None and cout_pad > cout:    # lane-dense head output
        wk = jnp.pad(wk, ((0, 0), (0, 0), (0, cout_pad - cout)))
        bk = jnp.pad(bk, (0, cout_pad - cout))
        cout = cout_pad
    wk = wk.astype(jnp.bfloat16)
    bk = bk.astype(jnp.float32).reshape(1, cout)
    pad = dilation
    # bf16 resident padded block halves the VMEM footprint (v7x relief).
    xp = jnp.pad(x.astype(jnp.bfloat16), ((0, 0), (pad, pad), (pad, pad), (0, 0)))
    hp, wpd = h + 2 * pad, w + 2 * pad
    rb = _pick_rb(h, w)
    m = rb * w

    args = [xp, wk, bk]
    in_specs = [pl.BlockSpec((1, hp, wpd, cin), lambda i, r: (i, 0, 0, 0)),
                pl.BlockSpec((9, cin, cout), lambda i, r: (0, 0, 0)),
                pl.BlockSpec((1, cout), lambda i, r: (0, 0))]
    if in_scale is not None:                        # (n, 1, cin) per-image scale
        args.append(in_scale.astype(jnp.float32))
        in_specs.append(pl.BlockSpec((1, 1, cin), lambda i, r: (i, 0, 0)))
    if add is not None:
        args.append(add.reshape(n, h * w, add.shape[-1]))
        in_specs.append(pl.BlockSpec((1, m, cout), lambda i, r: (i, r, 0)))
    out = pl.pallas_call(
        functools.partial(_conv3x3_kernel, rb=rb, ow=w, dil=dilation,
                          pre_relu=pre_relu, act=act,
                          has_add=add is not None, has_scale=in_scale is not None),
        out_shape=jax.ShapeDtypeStruct((n, h * w, cout), out_dtype),
        grid_spec=pltpu.PrefetchScalarGridSpec(
            num_scalar_prefetch=0, grid=(n, h // rb), in_specs=in_specs,
            out_specs=pl.BlockSpec((1, m, cout), lambda i, r: (i, r, 0)),
            scratch_shapes=[pltpu.VMEM((m, cout), jnp.float32)]),
        compiler_params=pltpu.CompilerParams(
            dimension_semantics=("parallel", "parallel"),
            vmem_limit_bytes=_VMEM_LIMIT),
    )(*args)
    return out.reshape(n, h, w, cout)


# ----------------------------------------------------------------------------
# Kernel 3: fused DWconv = depthwise 3x3 dilated (VPU) + pointwise 1x1 (MXU),
#           row-blocked, with optional fused add / act / sigmoid-gate epilogues
# ----------------------------------------------------------------------------
def _dwconv_kernel(*refs, rb, ow, dil, act, has_add, has_gate):
    x_ref, wd_ref, bd_ref, wp_ref, bp_ref = refs[:5]
    idx = 5
    add_ref = gate_ref = None
    if has_add:
        add_ref = refs[idx]; idx += 1
    if has_gate:
        gate_ref = refs[idx]; idx += 1
    o_ref = refs[idx]; idx += 1
    d_ref = refs[idx]

    r0 = pl.program_id(1) * rb
    m = rb * ow
    cin = wd_ref.shape[1]
    for t in range(9):                              # depthwise taps in fp32 (VPU)
        dy, dx = (t // 3) * dil, (t % 3) * dil
        tap = x_ref[0, pl.ds(r0 + dy, rb), pl.ds(dx, ow), :].reshape(m, cin)
        part = tap.astype(jnp.float32) * wd_ref[t]
        if t == 0:
            d_ref[...] = part
        else:
            d_ref[...] += part
    d = d_ref[...] + bd_ref[...]
    y = jnp.dot(d.astype(jnp.bfloat16), wp_ref[...],
                preferred_element_type=jnp.float32) + bp_ref[...]
    if add_ref is not None:
        y = y + add_ref[0].astype(jnp.float32)
    if act == "relu":
        y = jnp.maximum(y, 0.0)
    elif act == "sigmoid":
        y = jax.nn.sigmoid(y)
    if gate_ref is not None:                        # BiFFM: sigmoid(y) * g fused
        y = jax.nn.sigmoid(y) * gate_ref[0].astype(jnp.float32)
    o_ref[0] = y.astype(o_ref.dtype)


def dwconv(p, x, dilation=1, act=None, add=None, gate=None, out_dtype=jnp.bfloat16):
    n, h, w, cin = x.shape
    cout = p["wp"].shape[-1]
    pad = dilation
    xp = jnp.pad(x.astype(jnp.bfloat16), ((0, 0), (pad, pad), (pad, pad), (0, 0)))
    hp, wpd = h + 2 * pad, w + 2 * pad
    rb = _pick_rb(h, w)
    m = rb * w
    args = [xp,
            p["wd"].astype(jnp.float32),
            p["bd"].astype(jnp.float32).reshape(1, cin),
            p["wp"].astype(jnp.bfloat16),
            p["bp"].astype(jnp.float32).reshape(1, cout)]
    in_specs = [pl.BlockSpec((1, hp, wpd, cin), lambda i, r: (i, 0, 0, 0)),
                pl.BlockSpec((9, cin), lambda i, r: (0, 0)),
                pl.BlockSpec((1, cin), lambda i, r: (0, 0)),
                pl.BlockSpec((cin, cout), lambda i, r: (0, 0)),
                pl.BlockSpec((1, cout), lambda i, r: (0, 0))]
    for extra in (add, gate):
        if extra is not None:
            args.append(extra.reshape(n, h * w, cout))
            in_specs.append(pl.BlockSpec((1, m, cout), lambda i, r: (i, r, 0)))
    out = pl.pallas_call(
        functools.partial(_dwconv_kernel, rb=rb, ow=w, dil=dilation, act=act,
                          has_add=add is not None, has_gate=gate is not None),
        out_shape=jax.ShapeDtypeStruct((n, h * w, cout), out_dtype),
        grid_spec=pltpu.PrefetchScalarGridSpec(
            num_scalar_prefetch=0, grid=(n, h // rb), in_specs=in_specs,
            out_specs=pl.BlockSpec((1, m, cout), lambda i, r: (i, r, 0)),
            scratch_shapes=[pltpu.VMEM((m, cin), jnp.float32)]),
        compiler_params=pltpu.CompilerParams(
            dimension_semantics=("parallel", "parallel"),
            vmem_limit_bytes=_VMEM_LIMIT),
    )(*args)
    return out.reshape(n, h, w, cout)


# ----------------------------------------------------------------------------
# Kernel 4: ATG psi head — DWconv(Fint->1) + sigmoid + gating of x, fully fused
#           (the 1-lane gate map is reduced in-register, never stored to HBM)
# ----------------------------------------------------------------------------
def _psi_gate_kernel(p_ref, x_ref, wd_ref, bd_ref, wpv_ref, bp_ref, o_ref, d_ref,
                     *, rb, ow, dil):
    r0 = pl.program_id(1) * rb
    m = rb * ow
    fint = wd_ref.shape[1]
    for t in range(9):
        dy, dx = (t // 3) * dil, (t % 3) * dil
        tap = p_ref[0, pl.ds(r0 + dy, rb), pl.ds(dx, ow), :].reshape(m, fint)
        part = tap.astype(jnp.float32) * wd_ref[t]
        if t == 0:
            d_ref[...] = part
        else:
            d_ref[...] += part
    d = d_ref[...] + bd_ref[...]
    mgate = jnp.sum(d * wpv_ref[...], axis=-1, keepdims=True) + bp_ref[...]
    o_ref[0] = (x_ref[0].astype(jnp.float32) * jax.nn.sigmoid(mgate)).astype(o_ref.dtype)


def psi_gate(p, feat, x, dilation=8):
    n, h, w, fint = feat.shape
    cx = x.shape[-1]
    pad = dilation
    fp = jnp.pad(feat.astype(jnp.bfloat16), ((0, 0), (pad, pad), (pad, pad), (0, 0)))
    hp, wpd = h + 2 * pad, w + 2 * pad
    rb = _pick_rb(h, w)
    m = rb * w
    out = pl.pallas_call(
        functools.partial(_psi_gate_kernel, rb=rb, ow=w, dil=dilation),
        out_shape=jax.ShapeDtypeStruct((n, h * w, cx), jnp.bfloat16),
        grid_spec=pltpu.PrefetchScalarGridSpec(
            num_scalar_prefetch=0, grid=(n, h // rb),
            in_specs=[pl.BlockSpec((1, hp, wpd, fint), lambda i, r: (i, 0, 0, 0)),
                      pl.BlockSpec((1, m, cx), lambda i, r: (i, r, 0)),
                      pl.BlockSpec((9, fint), lambda i, r: (0, 0)),
                      pl.BlockSpec((1, fint), lambda i, r: (0, 0)),
                      pl.BlockSpec((1, fint), lambda i, r: (0, 0)),
                      pl.BlockSpec((1, 1), lambda i, r: (0, 0))],
            out_specs=pl.BlockSpec((1, m, cx), lambda i, r: (i, r, 0)),
            scratch_shapes=[pltpu.VMEM((m, fint), jnp.float32)]),
        compiler_params=pltpu.CompilerParams(
            dimension_semantics=("parallel", "parallel"),
            vmem_limit_bytes=_VMEM_LIMIT),
    )(fp, x.reshape(n, h * w, cx), p["wd"].astype(jnp.float32),
      p["bd"].reshape(1, fint), p["wp"].reshape(1, fint), p["bp"].reshape(1, 1))
    return out.reshape(n, h, w, cx)


# ----------------------------------------------------------------------------
# Kernel 5: tiled row-scale (x * per-image channel gate) — mem-bound, pipelined
# ----------------------------------------------------------------------------
def _row_scale_kernel(x_ref, s_ref, o_ref):
    o_ref[...] = (x_ref[...].astype(jnp.float32) * s_ref[...]).astype(o_ref.dtype)


def row_scale(x, s, out_dtype=jnp.bfloat16):
    n, h, w, c = x.shape
    hw = h * w
    thw = _pick_hw_tile(hw)
    out = pl.pallas_call(
        _row_scale_kernel,
        out_shape=jax.ShapeDtypeStruct((n, hw, c), out_dtype),
        grid_spec=pltpu.PrefetchScalarGridSpec(
            num_scalar_prefetch=0, grid=(n, hw // thw),
            in_specs=[pl.BlockSpec((1, thw, c), lambda i, t: (i, t, 0)),
                      pl.BlockSpec((1, 1, c), lambda i, t: (i, 0, 0))],
            out_specs=pl.BlockSpec((1, thw, c), lambda i, t: (i, t, 0))),
        compiler_params=pltpu.CompilerParams(
            dimension_semantics=("parallel", "parallel"),
            vmem_limit_bytes=_VMEM_LIMIT),
    )(x.reshape(n, hw, c), s)
    return out.reshape(n, h, w, c)


# ----------------------------------------------------------------------------
# Kernel 6: cSE — HW-tiled mean reduction + squeeze/excite MLP -> sigmoid scale
# ----------------------------------------------------------------------------
def _cse_scale_kernel(x_ref, w1_ref, b1_ref, w2_ref, b2_ref, o_ref, acc_ref,
                      *, hw_total, nhw):
    t = pl.program_id(1)

    @pl.when(t == 0)
    def _():
        acc_ref[...] = jnp.zeros_like(acc_ref)

    acc_ref[...] += jnp.sum(x_ref[0].astype(jnp.float32), axis=0, keepdims=True)

    @pl.when(t == nhw - 1)
    def _():
        mean = acc_ref[...] * (1.0 / hw_total)
        hdn = jnp.maximum(jnp.dot(mean, w1_ref[...],
                                  preferred_element_type=jnp.float32) + b1_ref[...], 0.0)
        s = jax.nn.sigmoid(jnp.dot(hdn, w2_ref[...],
                                   preferred_element_type=jnp.float32) + b2_ref[...])
        o_ref[0] = s


def cse(p, x):
    n, h, w, c = x.shape
    hw = h * w
    cr = p["w1"].shape[1]
    thw = _pick_hw_tile(hw)
    nhw = hw // thw
    s = pl.pallas_call(
        functools.partial(_cse_scale_kernel, hw_total=float(hw), nhw=nhw),
        out_shape=jax.ShapeDtypeStruct((n, 1, c), jnp.float32),
        grid_spec=pltpu.PrefetchScalarGridSpec(
            num_scalar_prefetch=0, grid=(n, nhw),
            in_specs=[pl.BlockSpec((1, thw, c), lambda i, t: (i, t, 0)),
                      pl.BlockSpec((c, cr), lambda i, t: (0, 0)),
                      pl.BlockSpec((1, cr), lambda i, t: (0, 0)),
                      pl.BlockSpec((cr, c), lambda i, t: (0, 0)),
                      pl.BlockSpec((1, c), lambda i, t: (0, 0))],
            out_specs=pl.BlockSpec((1, 1, c), lambda i, t: (i, 0, 0)),
            scratch_shapes=[pltpu.VMEM((1, c), jnp.float32)]),
        compiler_params=pltpu.CompilerParams(
            dimension_semantics=("parallel", "arbitrary"),
            vmem_limit_bytes=_VMEM_LIMIT),
    )(x.reshape(n, hw, c), p["w1"], p["b1"].reshape(1, cr),
      p["w2"], p["b2"].reshape(1, c))
    return row_scale(x, s)


# ----------------------------------------------------------------------------
# Kernel 7: BiFFM channel gate — HW-tiled sum/max pooling + dw1/dw2/dw3 path
#           (3x3 dilated depthwise on a 1x1 map == its centre tap) + sigmoid
# ----------------------------------------------------------------------------
def _biffm_gate_kernel(x_ref, d1w, d1b, p1w, p1b, d2w, d2b, p2w, p2b,
                       d3w, d3b, p3w, p3b, o_ref, sum_ref, max_ref, *, hw_total, nhw):
    t = pl.program_id(1)

    @pl.when(t == 0)
    def _():
        sum_ref[...] = jnp.zeros_like(sum_ref)
        max_ref[...] = jnp.full(max_ref.shape, -jnp.inf, max_ref.dtype)

    xb = x_ref[0].astype(jnp.float32)
    sum_ref[...] += jnp.sum(xb, axis=0, keepdims=True)
    max_ref[...] = jnp.maximum(max_ref[...], jnp.max(xb, axis=0, keepdims=True))

    @pl.when(t == nhw - 1)
    def _():
        avg = sum_ref[...] * (1.0 / hw_total)
        mx = max_ref[...]
        y1 = jnp.dot(avg * d1w[...] + d1b[...], p1w[...],
                     preferred_element_type=jnp.float32) + p1b[...]
        y2 = jnp.dot(mx * d2w[...] + d2b[...], p2w[...],
                     preferred_element_type=jnp.float32) + p2b[...]
        y = jnp.maximum(y1 + y2, 0.0)
        y = jnp.dot(y * d3w[...] + d3b[...], p3w[...],
                    preferred_element_type=jnp.float32) + p3b[...]
        o_ref[0] = jax.nn.sigmoid(y)


def biffm_channel_gate(p, x):
    n, h, w, c2 = x.shape
    hw = h * w
    d1, d2, d3 = p["dw1"], p["dw2"], p["dw3"]
    c2r = d1["wp"].shape[-1]
    thw = _pick_hw_tile(hw)
    nhw = hw // thw
    ws = (d1["wd"][4].reshape(1, c2), d1["bd"].reshape(1, c2), d1["wp"], d1["bp"].reshape(1, c2r),
          d2["wd"][4].reshape(1, c2), d2["bd"].reshape(1, c2), d2["wp"], d2["bp"].reshape(1, c2r),
          d3["wd"][4].reshape(1, c2r), d3["bd"].reshape(1, c2r), d3["wp"], d3["bp"].reshape(1, c2))
    in_specs = [pl.BlockSpec((1, thw, c2), lambda i, t: (i, t, 0))]
    in_specs += [pl.BlockSpec(wa.shape, (lambda i, t: (0, 0))) for wa in ws]
    return pl.pallas_call(
        functools.partial(_biffm_gate_kernel, hw_total=float(hw), nhw=nhw),
        out_shape=jax.ShapeDtypeStruct((n, 1, c2), jnp.float32),
        grid_spec=pltpu.PrefetchScalarGridSpec(
            num_scalar_prefetch=0, grid=(n, nhw), in_specs=in_specs,
            out_specs=pl.BlockSpec((1, 1, c2), lambda i, t: (i, 0, 0)),
            scratch_shapes=[pltpu.VMEM((1, c2), jnp.float32),
                            pltpu.VMEM((1, c2), jnp.float32)]),
        compiler_params=pltpu.CompilerParams(
            dimension_semantics=("parallel", "arbitrary"),
            vmem_limit_bytes=_VMEM_LIMIT),
    )(x.reshape(n, hw, c2), *ws)


# ----------------------------------------------------------------------------
# Module glue
# ----------------------------------------------------------------------------
def atr(p, x, in_scale=None):
    # conv_block: BN(id) -> ReLU -> Conv3x3 -> BN(id) -> ReLU -> Conv3x3; + skip.
    # in_scale (if given) is a per-image per-channel gate fused into the input.
    s = conv3x3(p["skip"], x, in_scale=in_scale)              # conv_skip (+ id BN)
    t1 = conv3x3(p["conv1"], x, pre_relu=True, in_scale=in_scale)
    t = conv3x3(p["conv2"], t1, pre_relu=True, add=s)         # skip-add fused
    return cse(p["se"], t)


def atg(p, g, x):
    g1 = dwconv(p["wg"], g, dilation=4)                       # W_g (+ id BN)
    psi = dwconv(p["wx"], x, dilation=6, add=g1, act="relu")  # relu(g1 + W_x(x))
    return psi_gate(p["psi"], psi, x, dilation=8)             # sigmoid(psi(.)) * x


def up(p, x1, x2=None):
    n, h, w, c = x1.shape
    x1 = bilinear_resize(x1, 2 * h, 2 * w, align_corners=True, out_dtype=jnp.bfloat16)
    if x2 is not None:
        # F.pad size matching is a no-op here (spatial sizes already match).
        if "attn" in p:
            x2 = atg(p["attn"], x1, x2)
        x1 = jnp.concatenate([x2, x1], axis=-1)
    return atr(p["conv"], x1)


def biffm(p, g, x):
    n, _, _, c2 = x.shape
    gate = biffm_channel_gate(p, x)                  # (n,1,c2) pooled sigmoid gate
    # TODO(synk): DeformConv2d has no Pallas equivalent; plain 3x3 conv stand-in.
    # TODO(synk): DynamicFilter / HWAB / HAAM are external modules without a
    # reference impl; identity stand-ins -> c1_df + c1_hwab == 2*c1, folded
    # exactly into the conv weights below.
    df2 = {"w": p["df"]["w"] * 2.0, "b": p["df"]["b"] * 2.0}
    c1 = conv3x3(df2, g)
    c2m = dwconv(p["dw4"], c1, dilation=8, gate=g)   # sigmoid(dw4(c1)) * g fused
    cout_ch = c2m.shape[-1]
    # Gate application (y = gate * x) is fused into the residual-ATR convs as a
    # per-channel input scale (ones on the c2m half); no standalone row_scale.
    fused_in = jnp.concatenate([x, c2m], axis=-1)
    in_scale = jnp.concatenate(
        [gate.reshape(n, c2), jnp.ones((n, cout_ch), jnp.float32)], axis=-1
    ).reshape(n, 1, c2 + cout_ch)
    return atr(p["residual"], fused_in, in_scale=in_scale)    # Dropout2d id (eval)


def _lin_idx(out_size, in_size, align_corners):
    if align_corners:
        if out_size == 1 or in_size == 1:
            src = jnp.zeros((out_size,), jnp.float32)
        else:
            src = jnp.arange(out_size, dtype=jnp.float32) * ((in_size - 1) / (out_size - 1))
    else:
        src = (jnp.arange(out_size, dtype=jnp.float32) + 0.5) * (in_size / out_size) - 0.5
        src = jnp.clip(src, 0.0, in_size - 1)
    i0 = jnp.clip(jnp.floor(src).astype(jnp.int32), 0, in_size - 1)
    i1 = jnp.minimum(i0 + 1, in_size - 1)
    return i0, i1, src - i0.astype(jnp.float32)


def bilinear_resize(x, oh, ow, align_corners, out_dtype=None):
    # TODO(synk): bilinear up/down-sampling kept as JAX gather glue (no Pallas kernel).
    n, h, w, c = x.shape
    x = x.astype(jnp.float32)
    i0, i1, wy = _lin_idx(oh, h, align_corners)
    j0, j1, wx = _lin_idx(ow, w, align_corners)
    top = x[:, i0, :, :] * (1.0 - wy)[None, :, None, None] + x[:, i1, :, :] * wy[None, :, None, None]
    out = top[:, :, j0, :] * (1.0 - wx)[None, None, :, None] + top[:, :, j1, :] * wx[None, None, :, None]
    return out.astype(out_dtype) if out_dtype is not None else out


# ----------------------------------------------------------------------------
# Deterministic parameter construction (Kaiming-style, matching __init__ shapes)
# ----------------------------------------------------------------------------
_KEY = [jax.random.PRNGKey(0)]


def _next_key():
    _KEY[0], k = jax.random.split(_KEY[0])
    return k


def conv_p(cin, cout, k):
    fan_in = cin * k * k
    w = math.sqrt(2.0 / fan_in) * jax.random.normal(_next_key(), (k, k, cin, cout), jnp.float32)
    bound = 1.0 / math.sqrt(fan_in)
    b = jax.random.uniform(_next_key(), (cout,), jnp.float32, -bound, bound)
    return {"w": w, "b": b}


def linear_p(cin, cout):
    bound = 1.0 / math.sqrt(cin)
    return {"w": jax.random.uniform(_next_key(), (cin, cout), jnp.float32, -bound, bound),
            "b": jax.random.uniform(_next_key(), (cout,), jnp.float32, -bound, bound)}


def dwconv_p(cin, cout):
    wd = math.sqrt(2.0 / 9.0) * jax.random.normal(_next_key(), (9, cin), jnp.float32)
    bd = jax.random.uniform(_next_key(), (cin,), jnp.float32, -1.0 / 3.0, 1.0 / 3.0)
    pw = conv_p(cin, cout, 1)
    return {"wd": wd, "bd": bd, "wp": pw["w"].reshape(cin, cout), "bp": pw["b"]}


def cse_p(c, r=16):
    cr = max(1, c // r)
    l1, l2 = linear_p(c, cr), linear_p(cr, c)
    return {"w1": l1["w"], "b1": l1["b"], "w2": l2["w"], "b2": l2["b"]}


def atr_p(cin, cout):
    return {"conv1": conv_p(cin, cout, 3), "conv2": conv_p(cout, cout, 3),
            "skip": conv_p(cin, cout, 3), "se": cse_p(cout)}


def atg_p(fg, fl, fint):
    return {"wg": dwconv_p(fg, fint), "wx": dwconv_p(fl, fint), "psi": dwconv_p(fint, 1)}


def up_p(in1, out, in2=0, attn=False):
    p = {"conv": atr_p(in1 + in2, out)}
    if attn:
        p["attn"] = atg_p(in1, in2, out)
    return p


def biffm_p(ch1, ch2, r2, ch_int, ch_out):
    c2r = ch2 // r2
    return {"dw1": dwconv_p(ch2, c2r), "dw2": dwconv_p(ch2, c2r), "dw3": dwconv_p(c2r, ch2),
            "df": conv_p(ch1, ch_int, 3), "dw4": dwconv_p(ch_int, ch_out),
            "residual": atr_p(ch1 + ch2, ch_out)}


def init_params(num_classes=1):
    p = {}
    # TODO(synk): swin transformer + timm efficientnet_b3 backbones are external
    # dependencies with no reference implementation here; replaced by avg-pool +
    # 1x1 Pallas conv stand-ins producing features at the correct strides/channels.
    p["backbone"] = {"xb1": conv_p(3, 96, 1), "xb2": conv_p(3, 192, 1),
                     "xb3": conv_p(3, 384, 1), "xb4": conv_p(3, 768, 1),
                     "xu64": conv_p(3, 32, 1), "xu2": conv_p(3, 48, 1),
                     "xu3": conv_p(3, 136, 1), "xu": conv_p(3, 232, 1)}
    p["up_c"] = biffm_p(232, 768, 2, 256, 232)
    p["up_c_1_1"] = biffm_p(136, 384, 2, 128, 136)
    p["up_c_1_2"] = up_p(232, 128, 136, attn=True)
    p["up_c_2_1"] = biffm_p(48, 192, 1, 64, 48)
    p["up_c_2_2"] = up_p(128, 64, 48, attn=True)
    p["up_c_3_1"] = biffm_p(32, 96, 1, 32, 32)
    p["up_c_3_2"] = up_p(64, 32, 32, attn=True)
    nc = num_classes
    p["final_x"] = [conv_p(232, 64, 1), conv_p(64, 64, 3), conv_p(64, nc, 3)]
    p["final_1"] = [conv_p(128, 64, 3), conv_p(64, nc, 3)]
    p["final_2"] = [conv_p(64, 64, 3), conv_p(64, nc, 3)]
    p["final_3"] = [conv_p(32, 32, 3), conv_p(32, nc, 3)]
    return p


def _avg_pool(x, f):
    n, h, w, c = x.shape
    return x.reshape(n, h // f, f, w // f, f, c).mean(axis=(2, 4))


def _run_head(plist, ks, relus, z, nc):
    ncp = _rup(nc, 128)
    for idx, (cp, k, r) in enumerate(zip(plist, ks, relus)):
        a = "relu" if r else None
        last = idx == len(plist) - 1
        if k == 1:
            z = conv1x1(cp, z, act=a)
        else:
            # final conv writes a 128-lane padded f32 block (dense stores), sliced here
            z = conv3x3(cp, z, act=a, cout_pad=ncp if last else None,
                        out_dtype=jnp.float32 if last else jnp.bfloat16)
    return z[..., :nc]


def dffcnet_forward(p, imgs_nchw):
    x = jnp.transpose(imgs_nchw, (0, 2, 3, 1)).astype(jnp.float32)   # NCHW -> NHWC
    bb = p["backbone"]
    # Backbone stand-ins (see TODO in init_params). Dropout2d is identity (eval).
    x_b_1 = conv1x1(bb["xb1"], _avg_pool(x, 4), act="relu")      # swin stage 1
    x_b_2 = conv1x1(bb["xb2"], _avg_pool(x, 8), act="relu")      # swin stage 2
    x_b_3 = conv1x1(bb["xb3"], _avg_pool(x, 16), act="relu")     # swin stage 3
    x_b_4 = conv1x1(bb["xb4"], _avg_pool(x, 32), act="relu")     # swin stage 4
    x_u64 = conv1x1(bb["xu64"], _avg_pool(x, 4), act="relu")     # effnet blocks[1]
    x_u_2 = conv1x1(bb["xu2"], _avg_pool(x, 8), act="relu")      # effnet blocks[2]
    x_u_3 = conv1x1(bb["xu3"], _avg_pool(x, 16), act="relu")     # effnet blocks[3..4]
    x_u = conv1x1(bb["xu"], _avg_pool(x, 32), act="relu")        # effnet blocks[5]

    x_c = biffm(p["up_c"], x_u, x_b_4)
    x_c_1_1 = biffm(p["up_c_1_1"], x_u_3, x_b_3)
    x_c_1 = up(p["up_c_1_2"], x_c, x_c_1_1)
    x_c_2_1 = biffm(p["up_c_2_1"], x_u_2, x_b_2)
    x_c_2 = up(p["up_c_2_2"], x_c_1, x_c_2_1)
    x_c_3_1 = biffm(p["up_c_3_1"], x_u64, x_b_1)
    x_c_3 = up(p["up_c_3_2"], x_c_2, x_c_3_1)

    nc = p["final_x"][-1]["w"].shape[-1]
    map_x = bilinear_resize(_run_head(p["final_x"], (1, 3, 3), (True, True, False), x_c, nc),
                            x_c.shape[1] * 32, x_c.shape[2] * 32, align_corners=False)
    map_1 = bilinear_resize(_run_head(p["final_1"], (3, 3), (True, False), x_c_1, nc),
                            x_c_1.shape[1] * 16, x_c_1.shape[2] * 16, align_corners=False)
    map_2 = bilinear_resize(_run_head(p["final_2"], (3, 3), (True, False), x_c_2, nc),
                            x_c_2.shape[1] * 8, x_c_2.shape[2] * 8, align_corners=False)
    map_3 = bilinear_resize(_run_head(p["final_3"], (3, 3), (True, False), x_c_3, nc),
                            x_c_3.shape[1] * 4, x_c_3.shape[2] * 4, align_corners=False)
    to_nchw = lambda t: jnp.transpose(t, (0, 3, 1, 2))
    return to_nchw(map_x), to_nchw(map_1), to_nchw(map_2), to_nchw(map_3)


if __name__ == "__main__":
    params = init_params(num_classes=1)
    imgs = jax.random.normal(jax.random.PRNGKey(0), (2, 3, 64, 64), jnp.float32)  # NCHW input
    outs = dffcnet_forward(params, imgs)
    outs = jax.block_until_ready(outs)
    assert all(o.shape == (2, 1, 64, 64) for o in outs)
    assert all(bool(jnp.all(jnp.isfinite(o))) for o in outs)
    print("KERNEL_OK")
</pallas_src>

<mosaic_0001>
module attributes {stable_mosaic.version = 11 : i64} {
  func.func @_mm_kernel_nk1(%arg0: i32, %arg1: i32, %arg2: memref<128x3xbf16, #tpu.memory_space<vmem>>, %arg3: memref<3x128xbf16, #tpu.memory_space<vmem>>, %arg4: memref<1x128xf32, #tpu.memory_space<vmem>>, %arg5: memref<128x128xbf16, #tpu.memory_space<vmem>>) attributes {dimension_semantics = [#tpu.dimension_semantics<parallel>, #tpu.dimension_semantics<parallel>], iteration_bounds = array<i64: 4, 1>, scalar_prefetch = 0 : i64, scratch_operands = 0 : i64, tpu.core_type = #tpu.core_type<tc>, window_params = [{transform_indices = @transform_0, window_bounds = array<i64: 128, 3>}, {transform_indices = @transform_1, window_bounds = array<i64: 3, 128>}, {transform_indices = @transform_2, window_bounds = array<i64: 1, 128>}, {transform_indices = @transform_3, window_bounds = array<i64: 128, 128>}]} {
    %c0 = arith.constant 0 : index
    %c0_0 = arith.constant 0 : index
    %0 = vector.load %arg2[%c0, %c0_0] : memref<128x3xbf16, #tpu.memory_space<vmem>>, vector<128x3xbf16>
    %c0_1 = arith.constant 0 : index
    %c0_2 = arith.constant 0 : index
    %1 = vector.load %arg3[%c0_1, %c0_2] : memref<3x128xbf16, #tpu.memory_space<vmem>>, vector<3x128xbf16>
    %cst = arith.constant dense<0.000000e+00> : vector<128x128xf32>
    %2 = tpu.matmul %0, %1, %cst {dimension_numbers = #tpu.dot_dimension_numbers<[1], [0], [0], [1], [0, 0, 1, 1], [], []>} : vector<128x3xbf16>, vector<3x128xbf16>, vector<128x128xf32> -> vector<128x128xf32>
    %c0_3 = arith.constant 0 : index
    %c0_4 = arith.constant 0 : index
    %3 = vector.load %arg4[%c0_3, %c0_4] : memref<1x128xf32, #tpu.memory_space<vmem>>, vector<1x128xf32>
    %4 = vector.broadcast %3 : vector<1x128xf32> to vector<128x128xf32>
    %5 = arith.addf %2, %4 : vector<128x128xf32>
    %cst_5 = arith.constant 0.000000e+00 : f32
    %6 = vector.broadcast %cst_5 : f32 to vector<128x128xf32>
    %7 = arith.maximumf %5, %6 : vector<128x128xf32>
    %8 = arith.truncf %7 : vector<128x128xf32> to vector<128x128xbf16>
    %c0_6 = arith.constant 0 : index
    %c0_7 = arith.constant 0 : index
    %9 = vector.load %arg5[%c0_6, %c0_7] : memref<128x128xbf16, #tpu.memory_space<vmem>>, vector<128x128xbf16>
    tpu.vector_store %arg5[%c0_6, %c0_7], %8 {strides = array<i32>} : memref<128x128xbf16, #tpu.memory_space<vmem>>, vector<128x128xbf16>,
    return
  }
  func.func @transform_0(%arg0: i32, %arg1: i32) -> (i32, i32) {
    %c0_i32 = arith.constant 0 : i32
    %c0_i32_0 = arith.constant 0 : i32
    return %arg0, %c0_i32 : i32, i32
  }
  func.func @transform_1(%arg0: i32, %arg1: i32) -> (i32, i32) {
    %c0_i32 = arith.constant 0 : i32
    %c0_i32_0 = arith.constant 0 : i32
    return %c0_i32, %arg1 : i32, i32
  }
  func.func @transform_2(%arg0: i32, %arg1: i32) -> (i32, i32) {
    %c0_i32 = arith.constant 0 : i32
    %c0_i32_0 = arith.constant 0 : i32
    return %c0_i32, %arg1 : i32, i32
  }
  func.func @transform_3(%arg0: i32, %arg1: i32) -> (i32, i32) {
    %c0_i32 = arith.constant 0 : i32
    return %arg0, %arg1 : i32, i32
  }
}

</mosaic_0001>

<bundles_post_ra>
// kernel: tpu_custom_call.1
= control target key start
LH: loop header
LB: loop body
LE: loop exit
PB: predicated region body
PF: predicated region fallthrough
CT: control target
= control target key end

     0   :  { %8 = vsyncpa [#allocation3], 0  ;;  %s1072_s0 = inlined_call_operand.vmem [shape: bf16[512,3], index: 0, kind: input, shape index: {}]   ;;  %s1073_s1 = inlined_call_operand.vmem [shape: bf16[3,128], index: 1, kind: input, shape index: {}]   ;;  %s1074_s2 = inlined_call_operand.vmem [shape: f32[1,128], index: 2, kind: input, shape index: {}]   ;;  %s1075_s3 = inlined_call_operand.hbm [shape: bf16[512,128], index: 3, kind: output, shape index: {}]  }
   0x1   :  { %10 = vsyncpa [#allocation3 + $0x1], 0  ;;  %s930_s12 = smov 0   ;;  %s932_s13 = smov 0  }
   0x2   :  { %s934_s14 = smov 0   ;;  %s936_s15 = smov 0  }
   0x3   :  { %s938_s16 = smov 0   ;;  %s940_s17 = smov 0  }
   0x4 LB: > { %s621_s18 = sadd.s32 4294967295, %s904_s17   ;;  %s622_s19 = sadd.s32 4294967294, %s904_s17   ;;  %s904_s17 = sphi %s940_s17, %s16_s17   ;;  %s900_s16 = sphi %s938_s16, %s1082_s16   ;;  %s896_s15 = sphi %s936_s15, %s1081_s15   ;;  %s892_s14 = sphi %s934_s14, %s1080_s14   ;;  %s888_s13 = sphi %s932_s13, %s1079_s13   ;;  %s884_s12 = sphi %s930_s12, %s1078_s12  }
   0x5   : > { %s28_s20 = sadd.s32 1, %s900_s16  ;;  %s115_s21 = sadd.s32 1, %s892_s14 }
   0x6   : > { %p30_p0 = scmp.ge.s32.totalorder %s28_s20, 4  ;;  %p125_p1 = scmp.ne.s32.totalorder %s892_s14, %s888_s13 }
   0x7   : > { %p126_p2 = scmp.eq.s32.totalorder %s621_s18, 3  ;;  %p131_p3 = scmp.ne.s32.totalorder %s888_s13, %s884_s12 }
   0x8   : > { %s1084_s20 = smov (%p30_p0, %s28_s20), 0  ;;  %p132_p5 = scmp.eq.s32.totalorder %s622_s19, 3 }
   0x9   : > { %p970_p4 = por %p126_p2, %p125_p1  ;;  %s110_s23 = ssub.s32 %s900_s16, %s1084_s20 }
   0xa   : > { %p627_p6 = scmp.ge.s32.totalorder %s904_s17, 1  ;;  %p113_p7 = scmp.eq.s32.totalorder %s110_s23, 0 }
   0xb   : > { %p977_p8 = por %p132_p5, %p131_p3  ;;  %p172_p9 = scmp.lt.s32.totalorder %s904_s17, 5 }
   0xc   : > { %s983_s25 = scalar_select %p113_p7, %s892_s14, %s115_s21  }
   0xd   : > { %p173_p10 = pnand %p627_p6, %p172_p9 }
   0xe   : > { %s629_s28 = sshll.u32 (!%p173_p10), %s896_s15, 4  ;;  %s200_s8 = sand.u32 (!%p173_p10), 1, %s888_s13  }
   0xf   : > { %176 = sbr.rel (%p173_p10) target bundleno = 256 (0x100), region = 32  ;;  %p204_p11 = scmp.lt.s32.totalorder (!%p173_p10), %s629_s28, 63 }
  0x10   : > { %s628_s9 = sshll.u32 (!%p173_p10), %s200_s8, 6  ;;  %s685_s11 = sshll.u32 (!%p173_p10), %s896_s15, 10 }
  0x11   : > { %s1006_s10 = scalar_lea.vmem (!%p173_p10), [#allocation2], %s628_s9  ;;  %s1018_s23 = scalar_lea.hbm (!%p173_p10), %s1075_s3, %s685_s11 }
  0x12   : > { %s522_s18 = sshll.u32 (!%p173_p10), %s1006_s10, 4  ;;  %s1027_s15 = scalar_lea.sflag (!%p173_p10), [#allocation3], %s200_s8  ;;  %s1020_s18 = int_to_ptr.vmem [resolvable:$true] %s522_s18 }
  0x13   : > { %s828_s26 = scalar_lea.vmem (!%p173_p10), %s1020_s18, 1024  ;;  %s907_s27 = smov (!%p173_p10), [#allocation2]  }
  0x14   : > { %v234_v0 = vld [vmem:[%s1073_s1] sm:$0x3]  ;;  %vm307_vm0 = vcmask 1040384   ;;  %vm308_vm1 = vcmask 1041408   ;;  %v906_v1 = vmov 65535   ;;  %s1086_s28 = smov (!%p204_p11, %s629_s28), 63  ;;  %p829_p12 = scmp.ne.s32.totalorder %s1020_s18, %s828_s26 }
  0x15   : > { %v309_v2 = vsel %vm307_vm0, 4294967295, %v906_v1  ;;  %s630_s29 = sshll.u32 %s1086_s28, 2  ;;  %vm282_vm2 = vcmask 23552   ;;  %v631_v14 = vld [vmem:[%s1074_s2] ss:$0 sm:$0xff]  ;;  %s832_s28 = sshll.u32 %s907_s27, 4  ;;  %s833_s28 = int_to_ptr.vmem [resolvable:$false] %s832_s28 }
  0x16   : > { %v310_v3 = vsel %vm308_vm1, %v309_v2, 0  ;;  %s207_s5 = scalar_lea.vmem %s1072_s0, %s630_s29  ;;  %p830_p13 = pnand %p829_p12, %p970_p4 }
  0x17   : > { %v312_v4 = vand.u32 %v310_v3, %v234_v0  ;;  %v820_v5 = vld [vmem:[%s207_s5] sm:$0xff]   ;;  %v822_v7 = vld [vmem:[%s207_s5 + $0x8] sm:$0xff]   ;;  %v824_v9 = vld [vmem:[%s207_s5 + $0x10] sm:$0xff]   ;;  %s834_s29 = scalar_lea.vmem %s833_s28, 2048  ;;  %p835_p1 = scmp.lt.s32.totalorder %s1020_s18, %s833_s28 }
  0x18   : > { %v821_v6 = vld [vmem:[%s207_s5 + $0x20] sm:$0xff]   ;;  %744 = vmatprep.mubr.msk.bf16.mxu0 %vm282_vm2, %v820_v5  ;;  %v823_v8 = vld [vmem:[%s207_s5 + $0x28] sm:$0xff]   ;;  %v825_v10 = vld [vmem:[%s207_s5 + $0x30] sm:$0xff]   ;;  %p831_p0 = pneg %p830_p13  ;;  %p836_p2 = scmp.lt.s32.totalorder %s834_s29, %s828_s26 }
  0x19   : > { %742 = vmatprep.subr.bf16.mxu0 %v312_v4  ;;  %760 = vmatprep.subr.bf16.mxu1 %v312_v4  ;;  %v826_v11 = vld [vmem:[%s207_s5 + $0x18] sm:$0xff]  }
  0x1a   : > { %743 = vmatpush3.bf16.msra.mxu0 %v312_v4  ;;  %761 = vmatpush3.bf16.msra.mxu1 %v312_v4  ;;  %v827_v12 = vld [vmem:[%s207_s5 + $0x38] sm:$0xff]   ;;  %p837_p3 = por %p836_p2, %p835_p1 }
  0x1b   : > { %752 = vmatprep.mubr.msk.bf16.mxu1 %vm282_vm2, %v821_v6 }
  0x1c   : > { %p838_p5 = pnand %p837_p3, %p831_p0 }
  0x1d   : > { %745 = vmatmul.mubr.msk.bf16.vlgmr.msra.gmra.mxu0 %vm282_vm2, %v822_v7  ;;  %753 = vmatmul.mubr.msk.bf16.vlgmr.msra.gmra.mxu1 %vm282_vm2, %v823_v8 }
  0x1e   : > { %748 = vmatprep.mubr.msk.bf16.mxu0 %vm282_vm2, %v824_v9  ;;  %756 = vmatprep.mubr.msk.bf16.mxu1 %vm282_vm2, %v825_v10 }
  0x25   : > { %749 = vmatmul.mubr.msk.bf16.gmra.mxu0 %vm282_vm2, %v826_v11  ;;  %757 = vmatmul.mubr.msk.bf16.gmra.mxu1 %vm282_vm2, %v827_v12 }
  0xdd   : > { %v746_v13 = vpop.f32.mrf.mxu0  ;;  %v754_v15 = vpop.f32.mrf.mxu1 }
  0xde   : > { %v357_v17 = vadd.f32 %v746_v13, %v631_v14  ;;  %v389_v19 = vadd.f32 %v754_v15, %v631_v14 }
  0xdf   : > { %v348_v16 = vpop.f32.mrf.mxu0  ;;  %v380_v18 = vpop.f32.mrf.mxu1 }
  0xe0   : > { %v349_v21 = vadd.f32 %v631_v14, %v348_v16  ;;  %v381_v24 = vadd.f32 %v631_v14, %v380_v18  ;;  %v413_v27 = vmax.f32 %v357_v17, 0.0  ;;  %v421_v31 = vmax.f32 %v389_v19, 0.0 }
  0xe1   : > { %v747_v20 = vpop.f32.mrf.mxu0  ;;  %v755_v23 = vpop.f32.mrf.mxu1 }
  0xe2   : > { %v360_v22 = vadd.f32 %v747_v20, %v631_v14  ;;  %v392_v25 = vadd.f32 %v755_v23, %v631_v14  ;;  %v411_v35 = vmax.f32 %v349_v21, 0.0  ;;  %v419_v39 = vmax.f32 %v381_v24, 0.0 }
  0xe3   : > { %v351_v26 = vpop.f32.mrf.mxu0  ;;  %v383_v30 = vpop.f32.mrf.mxu1 }
  0xe4   : > { %v414_v28 = vmax.f32 %v360_v22, 0.0  ;;  %v352_v29 = vadd.f32 %v631_v14, %v351_v26  ;;  %v422_v32 = vmax.f32 %v392_v25, 0.0  ;;  %v384_v33 = vadd.f32 %v631_v14, %v383_v30 }
  0xe5   : > { %v750_v34 = vpop.f32.mrf.mxu0  ;;  %v758_v38 = vpop.f32.mrf.mxu1 }
  0xe6   : > { %v694_v36 = vpack.c.bf16 %v414_v28, %v413_v27  ;;  %v412_v37 = vmax.f32 %v352_v29, 0.0  ;;  %v714_v40 = vpack.c.bf16 %v422_v32, %v421_v31  ;;  %v420_v41 = vmax.f32 %v384_v33, 0.0 }
  0xe7   : > { %v364_v42 = vpop.f32.mrf.mxu0  ;;  %v373_v44 = vadd.f32 %v750_v34, %v631_v14  ;;  %v396_v45 = vpop.f32.mrf.mxu1  ;;  %v405_v47 = vadd.f32 %v758_v38, %v631_v14 }
  0xe8   : > { %726 = vst [vmem:[%s1006_s10 + $0x8] sm:$0xff] %v694_v36   ;;  %v689_v43 = vpack.c.bf16 %v412_v37, %v411_v35  ;;  %730 = vst [vmem:[%s1006_s10 + $0x28] sm:$0xff] %v714_v40   ;;  %v709_v46 = vpack.c.bf16 %v420_v41, %v419_v39  ;;  %v365_v49 = vadd.f32 %v631_v14, %v364_v42 }
  0xe9   : > { %v751_v48 = vpop.f32.mrf.mxu0  ;;  %v759_v51 = vpop.f32.mrf.mxu1  ;;  %v397_v52 = vadd.f32 %v631_v14, %v396_v45  ;;  %v417_v55 = vmax.f32 %v373_v44, 0.0  ;;  %v425_v59 = vmax.f32 %v405_v47, 0.0 }
  0xea   : > { %690 = vst [vmem:[%s1006_s10] sm:$0xff] %v689_v43   ;;  %v376_v50 = vadd.f32 %v751_v48, %v631_v14  ;;  %729 = vst [vmem:[%s1006_s10 + $0x20] sm:$0xff] %v709_v46   ;;  %v408_v53 = vadd.f32 %v759_v51, %v631_v14  ;;  %v415_v62 = vmax.f32 %v365_v49, 0.0 }
  0xeb   : > { %v367_v54 = vpop.f32.mrf.mxu0  ;;  %v399_v58 = vpop.f32.mrf.mxu1  ;;  %v423_v1 = vmax.f32 %v397_v52, 0.0 }
  0xec   : > { %v418_v56 = vmax.f32 %v376_v50, 0.0  ;;  %v368_v57 = vadd.f32 %v631_v14, %v367_v54  ;;  %v426_v60 = vmax.f32 %v408_v53, 0.0  ;;  %v400_v61 = vadd.f32 %v631_v14, %v399_v58 }
  0xee   : > { %v704_v63 = vpack.c.bf16 %v418_v56, %v417_v55  ;;  %v416_v0 = vmax.f32 %v368_v57, 0.0  ;;  %v724_v2 = vpack.c.bf16 %v426_v60, %v425_v59  ;;  %v424_v3 = vmax.f32 %v400_v61, 0.0 }
  0xf0   : > { %728 = vst [vmem:[%s1006_s10 + $0x18] sm:$0xff] %v704_v63   ;;  %v699_v4 = vpack.c.bf16 %v416_v0, %v415_v62  ;;  %732 = vst [vmem:[%s1006_s10 + $0x38] sm:$0xff] %v724_v2   ;;  %v719_v5 = vpack.c.bf16 %v424_v3, %v423_v1 }
  0xf2   : > { %727 = vst [vmem:[%s1006_s10 + $0x10] sm:$0xff] %v699_v4   ;;  %731 = vst [vmem:[%s1006_s10 + $0x30] sm:$0xff] %v719_v5  }
  0xf3   : > { %841 = shalt.err (!%p838_p5)
}
  0xf4   : > { %s842_s30 = scalar_lea.hbm %s1018_s23, 1024  ;;  %s846_s6 = scalar_lea.hbm %s1075_s3, 4096 }
  0xf5   : > { %p843_p6 = scmp.ne.s32.totalorder %s1018_s23, %s842_s30  ;;  %p847_p10 = scmp.lt.s32.totalorder %s1018_s23, %s1075_s3 }
  0xf6   : > { %p848_p11 = scmp.lt.s32.totalorder %s846_s6, %s842_s30 }
  0xf7   : > { %p844_p7 = pnand %p843_p6, %p970_p4 }
  0xf8   : > { %p849_p12 = por %p848_p11, %p847_p10 }
  0xf9   : > { %p845_p9 = pneg %p844_p7 }
  0xfb   : > { %p850_p13 = pnand %p849_p12, %p845_p9 }
  0xfd   : > { %853 = shalt.err (!%p850_p13)
}
  0xfe   : > { %s908_s9 = smov 64   ;;  %s909_s10 = smov 4  }
  0xff   : > { %762 = dma.vmem_to_hbm [thread:$0]  (%p970_p4), %s1020_s18, 1024, %s1018_s23, %s1027_s15, %s908_s9, %s908_s9, %s909_s10  }
 0x100 PF: > { %p768_p0 = scmp.ge.s32.totalorder %s904_s17, 2  ;;  %s537_s11 = sand.u32 1, %s884_s12  }
 0x101   : > { %s538_s19 = scalar_lea.sflag [#allocation3], %s537_s11 }
 0x102   : > { %p765_p1 = pnand %p768_p0, %p977_p8 }
 0x104   : > { %p766_p2 = pneg %p765_p1 }
 0x106   : > { %879 = dma.done.wait (%p766_p2), %s538_s19, 1024  }
 0x107   : > { %881 = vsyncadd (%p766_p2), %s538_s19, 4294966272  ;;  %s16_s17 = sadd.s32 1, %s904_s17   ;;  %s1078_s12 = smov %s888_s13 }
 0x108   : > { %p13_p3 = scmp.ge.s32.totalorder %s16_s17, 6   ;;  %s1079_s13 = smov %s892_s14 }
 0x109   : > { %s1080_s14 = smov %s983_s25  ;;  %s1081_s15 = smov %s900_s16 }
 0x10a   : > { %s1082_s16 = smov %s1084_s20  ;;  %15 = sbr.rel (!%p13_p3) target bundleno = 4 (0x4), region = 73 }
 0x10f   :  { %543 = vsyncpa [#allocation3], 1 }
 0x110   :  { %545 = vsyncpa [#allocation3 + $0x1], 1 }

</bundles_post_ra>
